<compile_context>
chip_gen: v6e
topology: v6e:2x2x1
jax: 0.10.0
libtpu: 0.0.40
codegen_flags: <defaults>
</compile_context>

<pallas_src>
import functools

import jax
import jax.numpy as jnp
from jax import lax
from jax.experimental import pallas as pl
from jax.experimental.pallas import tpu as pltpu

MU = 10.0 * 0.01  # 0.1, as in the module __init__


def wgan_gp_kernel(alpha_ref, real_ref, fake_ref, w1_ref, b1_ref, w2_ref,
                   b2_ref, gram_ref, out_ref, hr_acc_ref, hf_acc_ref, *,
                   b_true):
    """Grid axis 0 tiles the feature dim D (reduction axis)."""
    d_idx = pl.program_id(0)
    bp = real_ref.shape[0]           # padded batch (multiple of 16)

    @pl.when(d_idx == 0)
    def _init():
        hr_acc_ref[...] = jnp.zeros_like(hr_acc_ref)
        hf_acc_ref[...] = jnp.zeros_like(hf_acc_ref)

    # Inner loop: pure DMA + two small MXU dots (bf16 in, f32 accumulate).
    w1 = w1_ref[...]                                            # (TD, H) bf16
    hr_acc_ref[...] += jnp.dot(real_ref[...], w1,
                               preferred_element_type=jnp.float32)
    hf_acc_ref[...] += jnp.dot(fake_ref[...], w1,
                               preferred_element_type=jnp.float32)

    @pl.when(d_idx == pl.num_programs(0) - 1)
    def _finalize():
        alpha = alpha_ref[...]                                  # (Bp, 1)  f32
        b1 = b1_ref[...]                                        # (1, H)
        w2r = w2_ref[...]                                       # (1, H)
        b2 = b2_ref[...]                                        # (1, 1)

        hr = hr_acc_ref[...]                                    # (Bp, H) f32
        hf = hf_acc_ref[...]

        h_real = hr + b1
        h_fake = hf + b1
        # Linearity of the first layer:
        #   interp @ W1 = fake@W1 + alpha*(real@W1 - fake@W1)
        h_i = hf + alpha * (hr - hf) + b1                       # (Bp, H)

        # Second layer has N = 1: VPU mul + lane reduce, not MXU.
        y_real = jnp.sum(jnp.maximum(h_real, 0.0) * w2r,
                         axis=-1, keepdims=True) + b2           # (Bp, 1)
        y_fake = jnp.sum(jnp.maximum(h_fake, 0.0) * w2r,
                         axis=-1, keepdims=True) + b2

        # Analytic gradient norm via the Gram matrix G = W1^T W1:
        #   grads = g_hidden @ W1^T  =>  ||grads||^2 = g_hidden G g_hidden^T
        g_hidden = jnp.where(h_i > 0.0, w2r, 0.0)               # (Bp, H) f32
        gG = jnp.dot(g_hidden, gram_ref[...],
                     preferred_element_type=jnp.float32)        # (Bp, H)
        gn_sq = jnp.sum(g_hidden * gG, axis=-1, keepdims=True)  # (Bp, 1)
        grad_norm = jnp.sqrt(gn_sq)

        # Mask batch-padding rows; divide by the true batch size.
        row = lax.broadcasted_iota(jnp.int32, (bp, 1), 0)
        mask = (row < b_true).astype(jnp.float32)               # (Bp, 1)
        inv_b = 1.0 / b_true

        mean_real = jnp.sum(y_real * mask, axis=0, keepdims=True) * inv_b
        mean_fake = jnp.sum(y_fake * mask, axis=0, keepdims=True) * inv_b
        gp = jnp.sum(mask * (grad_norm - 1.0) ** 2,
                     axis=0, keepdims=True) * inv_b

        out_ref[...] = mean_real - mean_fake + MU * gp


def _choose_td(D, Bp, H, budget_bytes=24 << 20):
    """Largest D tile whose double-buffered bf16 streams fit the budget."""
    per_col = 2 * (2 * Bp + H) * 2           # 2 bufs x (real+fake rows + W1) bf16
    cap = max(128, budget_bytes // max(per_col, 1))
    if D <= cap:
        return D                             # single grid step
    for td in (4096, 2048, 1024, 512, 256, 128):
        if td <= cap and D % td == 0:
            return td
    # TODO(synk): ragged last D tile not handled; fall back to a full-D block.
    return D


def wgan_gp_loss(params, fake_nchw, real_nchw, alpha):
    """Flattens NCHW -> (B, D) and runs the gridded Pallas kernel."""
    w1, b1, w2, b2 = params
    B = real_nchw.shape[0]
    D = int(jnp.size(real_nchw)) // B
    H = w1.shape[1]

    # Dominant HBM streams in bf16; alpha stays tiny f32.
    real = real_nchw.reshape(B, D).astype(jnp.bfloat16)
    fake = fake_nchw.reshape(B, D).astype(jnp.bfloat16)
    alpha = alpha.reshape(B, 1).astype(jnp.float32)

    # Pad batch to a multiple of 16 (bf16 LHS packing); pad rows masked in-kernel.
    Bp = ((B + 15) // 16) * 16
    pad = Bp - B
    if pad:
        real = jnp.pad(real, ((0, pad), (0, 0)))
        fake = jnp.pad(fake, ((0, pad), (0, 0)))
        alpha = jnp.pad(alpha, ((0, pad), (0, 0)))

    # One consistent W1: bf16 feeds both the forward matmuls and the Gram matrix.
    w1_bf16 = w1.astype(jnp.bfloat16)
    gram = jnp.dot(w1_bf16.T, w1_bf16, preferred_element_type=jnp.float32)
    w2_row = w2.reshape(1, H).astype(jnp.float32)
    b1_row = b1.reshape(1, H).astype(jnp.float32)
    b2_sc = b2.reshape(1, 1).astype(jnp.float32)

    TD = _choose_td(D, Bp, H)
    grid = (pl.cdiv(D, TD),)

    kernel = functools.partial(wgan_gp_kernel, b_true=B)

    out = pl.pallas_call(
        kernel,
        out_shape=jax.ShapeDtypeStruct((1, 1), jnp.float32),
        grid_spec=pltpu.PrefetchScalarGridSpec(
            num_scalar_prefetch=0,
            grid=grid,
            in_specs=[
                pl.BlockSpec((Bp, 1), lambda d: (0, 0)),    # alpha  (f32)
                pl.BlockSpec((Bp, TD), lambda d: (0, d)),   # real   (bf16, D-tiled)
                pl.BlockSpec((Bp, TD), lambda d: (0, d)),   # fake   (bf16, D-tiled)
                pl.BlockSpec((TD, H), lambda d: (d, 0)),    # W1     (bf16, D-tiled)
                pl.BlockSpec((1, H), lambda d: (0, 0)),     # b1
                pl.BlockSpec((1, H), lambda d: (0, 0)),     # w2 (as row)
                pl.BlockSpec((1, 1), lambda d: (0, 0)),     # b2
                pl.BlockSpec((H, H), lambda d: (0, 0)),     # Gram(W1)
            ],
            out_specs=pl.BlockSpec((1, 1), lambda d: (0, 0)),
            scratch_shapes=[
                pltpu.VMEM((Bp, H), jnp.float32),           # h_real accumulator
                pltpu.VMEM((Bp, H), jnp.float32),           # h_fake accumulator
            ],
        ),
        compiler_params=pltpu.CompilerParams(
            dimension_semantics=("arbitrary",),      # D is a reduction axis
            vmem_limit_bytes=48 * 1024 * 1024,       # > v6e scoped default, < v7x physical
        ),
    )(alpha, real, fake, w1_bf16, b1_row, w2_row, b2_sc, gram)
    return out[0, 0]


# ---------- pure-JAX reference (jax.grad mirrors torch.autograd.grad) ----------
def _critic_ref(params, x_flat):
    w1, b1, w2, b2 = params
    h = x_flat @ w1 + b1
    return jnp.maximum(h, 0.0) @ w2 + b2


def _loss_ref(params, fake_nchw, real_nchw, alpha):
    B = real_nchw.shape[0]
    real_f = real_nchw.reshape(B, -1)
    fake_f = fake_nchw.reshape(B, -1)
    interp = alpha * real_f + (1.0 - alpha) * fake_f
    grads = jax.grad(lambda x: jnp.sum(_critic_ref(params, x)))(interp)
    gn = jnp.sqrt(jnp.sum(grads ** 2, axis=1))
    return (_critic_ref(params, real_f).mean()
            - _critic_ref(params, fake_f).mean()
            + MU * jnp.mean((gn - 1.0) ** 2))


if __name__ == "__main__":
    key = jax.random.PRNGKey(0)
    kr, kf, ka, kw1, kb1, kw2 = jax.random.split(key, 6)

    B, C, Himg, Wimg = 2, 4, 16, 16
    D = C * Himg * Wimg          # 1024
    HID = 128

    real = jax.random.normal(kr, (B, C, Himg, Wimg), jnp.float32)
    fake = jax.random.normal(kf, (B, C, Himg, Wimg), jnp.float32)
    # TODO(synk): the PyTorch module draws alpha with np.random inside forward;
    # here it is a deterministic explicit input (same per-sample broadcast semantics).
    alpha = jax.random.uniform(ka, (B, 1), jnp.float32)

    # Deterministic critic parameters (synthetic; no checkpoint load).
    w1 = jax.random.normal(kw1, (D, HID), jnp.float32) / jnp.sqrt(jnp.float32(D))
    b1 = jax.random.normal(kb1, (1, HID), jnp.float32) * 0.01
    w2 = jax.random.normal(kw2, (HID, 1), jnp.float32) / jnp.sqrt(jnp.float32(HID))
    b2 = jnp.zeros((1, 1), jnp.float32)
    params = (w1, b1, w2, b2)

    loss = wgan_gp_loss(params, fake, real, alpha)
    jax.block_until_ready(loss)

    # NOTE: bf16 inputs/W1 vs the f32 reference (and the cancellation-prone
    # mean_real - mean_fake term) is why the tolerance is 2e-2.
    ref = _loss_ref(params, fake, real, alpha)
    assert jnp.allclose(loss, ref, rtol=2e-2, atol=2e-2), (float(loss), float(ref))

    print("KERNEL_OK")
</pallas_src>

<mosaic_0001>
module attributes {stable_mosaic.version = 11 : i64} {
  func.func @wgan_gp_kernel(%arg0: i32, %arg1: memref<16x1xf32, #tpu.memory_space<vmem>>, %arg2: memref<16x1024xbf16, #tpu.memory_space<vmem>>, %arg3: memref<16x1024xbf16, #tpu.memory_space<vmem>>, %arg4: memref<1024x128xbf16, #tpu.memory_space<vmem>>, %arg5: memref<1x128xf32, #tpu.memory_space<vmem>>, %arg6: memref<1x128xf32, #tpu.memory_space<vmem>>, %arg7: memref<1x1xf32, #tpu.memory_space<vmem>>, %arg8: memref<128x128xf32, #tpu.memory_space<vmem>>, %arg9: memref<1x1xf32, #tpu.memory_space<vmem>>, %arg10: memref<16x128xf32, #tpu.memory_space<vmem>>, %arg11: memref<16x128xf32, #tpu.memory_space<vmem>>) attributes {dimension_semantics = [#tpu.dimension_semantics<arbitrary>], iteration_bounds = array<i64: 1>, scalar_prefetch = 0 : i64, scratch_operands = 2 : i64, tpu.core_type = #tpu.core_type<tc>, window_params = [{pipeline_mode = #tpu.pipeline_mode<synchronous>, transform_indices = @transform_0, window_bounds = array<i64: 16, 1>}, {transform_indices = @transform_1, window_bounds = array<i64: 16, 1024>}, {transform_indices = @transform_2, window_bounds = array<i64: 16, 1024>}, {transform_indices = @transform_3, window_bounds = array<i64: 1024, 128>}, {pipeline_mode = #tpu.pipeline_mode<synchronous>, transform_indices = @transform_4, window_bounds = array<i64: 1, 128>}, {pipeline_mode = #tpu.pipeline_mode<synchronous>, transform_indices = @transform_5, window_bounds = array<i64: 1, 128>}, {pipeline_mode = #tpu.pipeline_mode<synchronous>, transform_indices = @transform_6, window_bounds = array<i64: 1, 1>}, {pipeline_mode = #tpu.pipeline_mode<synchronous>, transform_indices = @transform_7, window_bounds = array<i64: 128, 128>}, {pipeline_mode = #tpu.pipeline_mode<synchronous>, transform_indices = @transform_8, window_bounds = array<i64: 1, 1>}]} {
    %c0_i32 = arith.constant 0 : i32
    %0 = arith.cmpi eq, %arg0, %c0_i32 : i32
    %1 = arith.extui %0 : i1 to i32
    %c0_i32_0 = arith.constant 0 : i32
    %2 = arith.cmpi ne, %1, %c0_i32_0 : i32
    scf.if %2 {
      %cst_17 = arith.constant 0.000000e+00 : f32
      %17 = vector.broadcast %cst_17 : f32 to vector<16x128xf32>
      %c0_18 = arith.constant 0 : index
      %c0_19 = arith.constant 0 : index
      %18 = vector.load %arg10[%c0_18, %c0_19] : memref<16x128xf32, #tpu.memory_space<vmem>>, vector<16x128xf32>
      tpu.vector_store %arg10[%c0_18, %c0_19], %17 {strides = array<i32>} : memref<16x128xf32, #tpu.memory_space<vmem>>, vector<16x128xf32>,
      %cst_20 = arith.constant 0.000000e+00 : f32
      %19 = vector.broadcast %cst_20 : f32 to vector<16x128xf32>
      %c0_21 = arith.constant 0 : index
      %c0_22 = arith.constant 0 : index
      %20 = vector.load %arg11[%c0_21, %c0_22] : memref<16x128xf32, #tpu.memory_space<vmem>>, vector<16x128xf32>
      tpu.vector_store %arg11[%c0_21, %c0_22], %19 {strides = array<i32>} : memref<16x128xf32, #tpu.memory_space<vmem>>, vector<16x128xf32>,
    } else {
    }
    %c0 = arith.constant 0 : index
    %c0_1 = arith.constant 0 : index
    %3 = vector.load %arg4[%c0, %c0_1] : memref<1024x128xbf16, #tpu.memory_space<vmem>>, vector<1024x128xbf16>
    %c0_2 = arith.constant 0 : index
    %c0_3 = arith.constant 0 : index
    %4 = vector.load %arg10[%c0_2, %c0_3] : memref<16x128xf32, #tpu.memory_space<vmem>>, vector<16x128xf32>
    %c0_4 = arith.constant 0 : index
    %c0_5 = arith.constant 0 : index
    %5 = vector.load %arg2[%c0_4, %c0_5] : memref<16x1024xbf16, #tpu.memory_space<vmem>>, vector<16x1024xbf16>
    %cst = arith.constant dense<0.000000e+00> : vector<16x128xf32>
    %6 = tpu.matmul %5, %3, %cst {dimension_numbers = #tpu.dot_dimension_numbers<[1], [0], [0], [1], [0, 0, 1, 1], [], []>} : vector<16x1024xbf16>, vector<1024x128xbf16>, vector<16x128xf32> -> vector<16x128xf32>
    %7 = arith.addf %4, %6 : vector<16x128xf32>
    %c0_6 = arith.constant 0 : index
    %c0_7 = arith.constant 0 : index
    %8 = vector.load %arg10[%c0_6, %c0_7] : memref<16x128xf32, #tpu.memory_space<vmem>>, vector<16x128xf32>
    tpu.vector_store %arg10[%c0_6, %c0_7], %7 {strides = array<i32>} : memref<16x128xf32, #tpu.memory_space<vmem>>, vector<16x128xf32>,
    %c0_8 = arith.constant 0 : index
    %c0_9 = arith.constant 0 : index
    %9 = vector.load %arg11[%c0_8, %c0_9] : memref<16x128xf32, #tpu.memory_space<vmem>>, vector<16x128xf32>
    %c0_10 = arith.constant 0 : index
    %c0_11 = arith.constant 0 : index
    %10 = vector.load %arg3[%c0_10, %c0_11] : memref<16x1024xbf16, #tpu.memory_space<vmem>>, vector<16x1024xbf16>
    %cst_12 = arith.constant dense<0.000000e+00> : vector<16x128xf32>
    %11 = tpu.matmul %10, %3, %cst_12 {dimension_numbers = #tpu.dot_dimension_numbers<[1], [0], [0], [1], [0, 0, 1, 1], [], []>} : vector<16x1024xbf16>, vector<1024x128xbf16>, vector<16x128xf32> -> vector<16x128xf32>
    %12 = arith.addf %9, %11 : vector<16x128xf32>
    %c0_13 = arith.constant 0 : index
    %c0_14 = arith.constant 0 : index
    %13 = vector.load %arg11[%c0_13, %c0_14] : memref<16x128xf32, #tpu.memory_space<vmem>>, vector<16x128xf32>
    tpu.vector_store %arg11[%c0_13, %c0_14], %12 {strides = array<i32>} : memref<16x128xf32, #tpu.memory_space<vmem>>, vector<16x128xf32>,
    %c0_i32_15 = arith.constant 0 : i32
    %14 = arith.cmpi eq, %arg0, %c0_i32_15 : i32
    %15 = arith.extui %14 : i1 to i32
    %c0_i32_16 = arith.constant 0 : i32
    %16 = arith.cmpi ne, %15, %c0_i32_16 : i32
    scf.if %16 {
      %c0_17 = arith.constant 0 : index
      %c0_18 = arith.constant 0 : index
      %17 = vector.load %arg1[%c0_17, %c0_18] : memref<16x1xf32, #tpu.memory_space<vmem>>, vector<16x1xf32>
      %c0_19 = arith.constant 0 : index
      %c0_20 = arith.constant 0 : index
      %18 = vector.load %arg5[%c0_19, %c0_20] : memref<1x128xf32, #tpu.memory_space<vmem>>, vector<1x128xf32>
      %c0_21 = arith.constant 0 : index
      %c0_22 = arith.constant 0 : index
      %19 = vector.load %arg6[%c0_21, %c0_22] : memref<1x128xf32, #tpu.memory_space<vmem>>, vector<1x128xf32>
      %c0_23 = arith.constant 0 : index
      %c0_24 = arith.constant 0 : index
      %20 = vector.load %arg7[%c0_23, %c0_24] : memref<1x1xf32, #tpu.memory_space<vmem>>, vector<1x1xf32>
      %c0_25 = arith.constant 0 : index
      %c0_26 = arith.constant 0 : index
      %21 = vector.load %arg10[%c0_25, %c0_26] : memref<16x128xf32, #tpu.memory_space<vmem>>, vector<16x128xf32>
      %c0_27 = arith.constant 0 : index
      %c0_28 = arith.constant 0 : index
      %22 = vector.load %arg11[%c0_27, %c0_28] : memref<16x128xf32, #tpu.memory_space<vmem>>, vector<16x128xf32>
      %23 = vector.broadcast %18 : vector<1x128xf32> to vector<16x128xf32>
      %24 = arith.addf %21, %23 : vector<16x128xf32>
      %25 = vector.broadcast %18 : vector<1x128xf32> to vector<16x128xf32>
      %26 = arith.addf %22, %25 : vector<16x128xf32>
      %27 = arith.subf %21, %22 : vector<16x128xf32>
      %28 = vector.broadcast %17 : vector<16x1xf32> to vector<16x128xf32>
      %29 = arith.mulf %28, %27 : vector<16x128xf32>
      %30 = arith.addf %22, %29 : vector<16x128xf32>
      %31 = vector.broadcast %18 : vector<1x128xf32> to vector<16x128xf32>
      %32 = arith.addf %30, %31 : vector<16x128xf32>
      %cst_29 = arith.constant 0.000000e+00 : f32
      %33 = vector.broadcast %cst_29 : f32 to vector<16x128xf32>
      %34 = arith.maximumf %24, %33 : vector<16x128xf32>
      %35 = vector.broadcast %19 : vector<1x128xf32> to vector<16x128xf32>
      %36 = arith.mulf %34, %35 : vector<16x128xf32>
      %cst_30 = arith.constant dense<0.000000e+00> : vector<16xf32>
      %37 = vector.multi_reduction <add>, %36, %cst_30 [1] : vector<16x128xf32> to vector<16xf32>
      %38 = vector.shape_cast %37 : vector<16xf32> to vector<16x1xf32>
      %39 = vector.broadcast %20 : vector<1x1xf32> to vector<16x1xf32>
      %40 = arith.addf %38, %39 : vector<16x1xf32>
      %cst_31 = arith.constant 0.000000e+00 : f32
      %41 = vector.broadcast %cst_31 : f32 to vector<16x128xf32>
      %42 = arith.maximumf %26, %41 : vector<16x128xf32>
      %43 = vector.broadcast %19 : vector<1x128xf32> to vector<16x128xf32>
      %44 = arith.mulf %42, %43 : vector<16x128xf32>
      %cst_32 = arith.constant dense<0.000000e+00> : vector<16xf32>
      %45 = vector.multi_reduction <add>, %44, %cst_32 [1] : vector<16x128xf32> to vector<16xf32>
      %46 = vector.shape_cast %45 : vector<16xf32> to vector<16x1xf32>
      %47 = vector.broadcast %20 : vector<1x1xf32> to vector<16x1xf32>
      %48 = arith.addf %46, %47 : vector<16x1xf32>
      %cst_33 = arith.constant 0.000000e+00 : f32
      %49 = vector.broadcast %cst_33 : f32 to vector<16x128xf32>
      %50 = arith.cmpf ogt, %32, %49 : vector<16x128xf32>
      %cst_34 = arith.constant 0.000000e+00 : f32
      %51 = vector.shape_cast %19 : vector<1x128xf32> to vector<1x128xf32>
      %52 = vector.broadcast %51 : vector<1x128xf32> to vector<16x128xf32>
      %53 = vector.broadcast %cst_34 : f32 to vector<16x128xf32>
      %54 = arith.select %50, %52, %53 : vector<16x128xi1>, vector<16x128xf32>
      %c0_35 = arith.constant 0 : index
      %c0_36 = arith.constant 0 : index
      %55 = vector.load %arg8[%c0_35, %c0_36] : memref<128x128xf32, #tpu.memory_space<vmem>>, vector<128x128xf32>
      %cst_37 = arith.constant dense<0.000000e+00> : vector<16x128xf32>
      %56 = tpu.matmul %54, %55, %cst_37 {dimension_numbers = #tpu.dot_dimension_numbers<[1], [0], [0], [1], [0, 0, 1, 1], [], []>} : vector<16x128xf32>, vector<128x128xf32>, vector<16x128xf32> -> vector<16x128xf32>
      %57 = arith.mulf %54, %56 : vector<16x128xf32>
      %cst_38 = arith.constant dense<0.000000e+00> : vector<16xf32>
      %58 = vector.multi_reduction <add>, %57, %cst_38 [1] : vector<16x128xf32> to vector<16xf32>
      %59 = vector.shape_cast %58 : vector<16xf32> to vector<16x1xf32>
      %60 = math.sqrt %59 : vector<16x1xf32>
      %61 = tpu.iota {dimensions = array<i32: 0>} : vector<16x1xi32>
      %c2_i32 = arith.constant 2 : i32
      %62 = vector.broadcast %c2_i32 : i32 to vector<16x1xi32>
      %63 = arith.cmpi slt, %61, %62 : vector<16x1xi32>
      %64 = arith.extui %63 : vector<16x1xi1> to vector<16x1xi32>
      %65 = arith.sitofp %64 : vector<16x1xi32> to vector<16x1xf32>
      %66 = arith.mulf %40, %65 : vector<16x1xf32>
      %cst_39 = arith.constant dense<0.000000e+00> : vector<1xf32>
      %67 = vector.multi_reduction <add>, %66, %cst_39 [0] : vector<16x1xf32> to vector<1xf32>
      %68 = vector.shape_cast %67 : vector<1xf32> to vector<1x1xf32>
      %cst_40 = arith.constant 5.000000e-01 : f32
      %69 = vector.broadcast %cst_40 : f32 to vector<1x1xf32>
      %70 = arith.mulf %68, %69 : vector<1x1xf32>
      %71 = arith.mulf %48, %65 : vector<16x1xf32>
      %cst_41 = arith.constant dense<0.000000e+00> : vector<1xf32>
      %72 = vector.multi_reduction <add>, %71, %cst_41 [0] : vector<16x1xf32> to vector<1xf32>
      %73 = vector.shape_cast %72 : vector<1xf32> to vector<1x1xf32>
      %cst_42 = arith.constant 5.000000e-01 : f32
      %74 = vector.broadcast %cst_42 : f32 to vector<1x1xf32>
      %75 = arith.mulf %73, %74 : vector<1x1xf32>
      %cst_43 = arith.constant 1.000000e+00 : f32
      %76 = vector.broadcast %cst_43 : f32 to vector<16x1xf32>
      %77 = arith.subf %60, %76 : vector<16x1xf32>
      %78 = arith.mulf %77, %77 : vector<16x1xf32>
      %79 = arith.mulf %65, %78 : vector<16x1xf32>
      %cst_44 = arith.constant dense<0.000000e+00> : vector<1xf32>
      %80 = vector.multi_reduction <add>, %79, %cst_44 [0] : vector<16x1xf32> to vector<1xf32>
      %81 = vector.shape_cast %80 : vector<1xf32> to vector<1x1xf32>
      %cst_45 = arith.constant 5.000000e-01 : f32
      %82 = vector.broadcast %cst_45 : f32 to vector<1x1xf32>
      %83 = arith.mulf %81, %82 : vector<1x1xf32>
      %84 = arith.subf %70, %75 : vector<1x1xf32>
      %cst_46 = arith.constant 1.000000e-01 : f32
      %85 = vector.broadcast %cst_46 : f32 to vector<1x1xf32>
      %86 = arith.mulf %85, %83 : vector<1x1xf32>
      %87 = arith.addf %84, %86 : vector<1x1xf32>
      %c0_47 = arith.constant 0 : index
      %c0_48 = arith.constant 0 : index
      %88 = vector.load %arg9[%c0_47, %c0_48] : memref<1x1xf32, #tpu.memory_space<vmem>>, vector<1x1xf32>
      tpu.vector_store %arg9[%c0_47, %c0_48], %87 {strides = array<i32>} : memref<1x1xf32, #tpu.memory_space<vmem>>, vector<1x1xf32>,
    } else {
    }
    return
  }
  func.func @transform_0(%arg0: i32) -> (i32, i32) {
    %c0_i32 = arith.constant 0 : i32
    %c0_i32_0 = arith.constant 0 : i32
    %c0_i32_1 = arith.constant 0 : i32
    return %c0_i32, %c0_i32_0 : i32, i32
  }
  func.func @transform_1(%arg0: i32) -> (i32, i32) {
    %c0_i32 = arith.constant 0 : i32
    %c0_i32_0 = arith.constant 0 : i32
    return %c0_i32, %arg0 : i32, i32
  }
  func.func @transform_2(%arg0: i32) -> (i32, i32) {
    %c0_i32 = arith.constant 0 : i32
    %c0_i32_0 = arith.constant 0 : i32
    return %c0_i32, %arg0 : i32, i32
  }
  func.func @transform_3(%arg0: i32) -> (i32, i32) {
    %c0_i32 = arith.constant 0 : i32
    %c0_i32_0 = arith.constant 0 : i32
    return %arg0, %c0_i32 : i32, i32
  }
  func.func @transform_4(%arg0: i32) -> (i32, i32) {
    %c0_i32 = arith.constant 0 : i32
    %c0_i32_0 = arith.constant 0 : i32
    %c0_i32_1 = arith.constant 0 : i32
    return %c0_i32, %c0_i32_0 : i32, i32
  }
  func.func @transform_5(%arg0: i32) -> (i32, i32) {
    %c0_i32 = arith.constant 0 : i32
    %c0_i32_0 = arith.constant 0 : i32
    %c0_i32_1 = arith.constant 0 : i32
    return %c0_i32, %c0_i32_0 : i32, i32
  }
  func.func @transform_6(%arg0: i32) -> (i32, i32) {
    %c0_i32 = arith.constant 0 : i32
    %c0_i32_0 = arith.constant 0 : i32
    %c0_i32_1 = arith.constant 0 : i32
    return %c0_i32, %c0_i32_0 : i32, i32
  }
  func.func @transform_7(%arg0: i32) -> (i32, i32) {
    %c0_i32 = arith.constant 0 : i32
    %c0_i32_0 = arith.constant 0 : i32
    %c0_i32_1 = arith.constant 0 : i32
    return %c0_i32, %c0_i32_0 : i32, i32
  }
  func.func @transform_8(%arg0: i32) -> (i32, i32) {
    %c0_i32 = arith.constant 0 : i32
    %c0_i32_0 = arith.constant 0 : i32
    %c0_i32_1 = arith.constant 0 : i32
    return %c0_i32, %c0_i32_0 : i32, i32
  }
}

</mosaic_0001>

<bundles_post_ra>
// kernel: tpu_custom_call.1
= control target key start
LH: loop header
LB: loop body
LE: loop exit
PB: predicated region body
PF: predicated region fallthrough
CT: control target
= control target key end

     0   :  { %s2174_s0 = inlined_call_operand.vmem [shape: f32[16,1], index: 0, kind: input, shape index: {}]   ;;  %s2175_s1 = inlined_call_operand.hbm [shape: bf16[16,1024], index: 1, kind: input, shape index: {}]   ;;  %s2176_s2 = inlined_call_operand.hbm [shape: bf16[16,1024], index: 2, kind: input, shape index: {}]   ;;  %s2177_s3 = inlined_call_operand.hbm [shape: bf16[1024,128], index: 3, kind: input, shape index: {}]   ;;  %s2178_s4 = inlined_call_operand.vmem [shape: f32[1,128], index: 4, kind: input, shape index: {}]   ;;  %s2179_s5 = inlined_call_operand.vmem [shape: f32[1,128], index: 5, kind: input, shape index: {}]   ;;  %s2180_s6 = inlined_call_operand.<no memory space> [shape: f32[1,1], index: 6, kind: input, shape index: {}]   ;;  %s2181_s7 = inlined_call_operand.hbm [shape: f32[128,128], index: 7, kind: input, shape index: {}]   ;;  %s2182_s8 = inlined_call_operand.hbm [shape: f32[1,1], index: 8, kind: output, shape index: {}]  }
   0x1   :  { %v13_v0 = vstv %s2180_s6 }
   0x2   :  { %14 = vst [vmem:[#allocation4] sm:$0x1] %v13_v0 }
   0x3   :  { %15 = vsyncpa [#allocation6], 0 }
   0x4   :  { %16 = vsyncpa [#allocation9], 0 }
   0x5   :  { %17 = vsyncpa [#allocation12], 0 }
   0x6   :  { %18 = vsyncpa [#allocation7], 0  ;;  %s1808_s29 = smov [#allocation8]   ;;  %s1809_s9 = smov [#allocation5]  }
   0x7   :  { %s38_s30 = sshll.u32 %s1808_s29, 4  ;;  %s26_s10 = sshll.u32 %s1809_s9, 4  ;;  %s39_s30 = int_to_ptr.vmem [resolvable:$true] %s38_s30  ;;  %s27_s10 = int_to_ptr.vmem [resolvable:$true] %s26_s10 }
   0x8   :  { %s1708_s11 = scalar_lea.vmem %s39_s30, 1024  ;;  %p1713_p1 = scmp.lt.s32.totalorder %s39_s30, %s39_s30 }
   0x9   :  { %p1709_p0 = scmp.ne.s32.totalorder %s39_s30, %s1708_s11  ;;  %p1714_p2 = scmp.lt.s32.totalorder %s1708_s11, %s1708_s11 }
   0xb   :  { %p1715_p3 = por %p1714_p2, %p1713_p1 }
   0xd   :  { %p1716_p4 = pnand %p1715_p3, %p1709_p0 }
   0xf   :  { %1719 = shalt.err (!%p1716_p4)
}
  0x10   :  { %s1810_s12 = smov 512   ;;  %s1811_s6 = smov 32  }
  0x11   :  { %44 = dma.hbm_to_vmem [thread:$0]  %s2176_s2, 1024, %s39_s30, [#allocation9], %s1810_s12, %s1810_s12, %s1811_s6  }
  0x12   :  { %s1728_s15 = scalar_lea.vmem %s27_s10, 1024  ;;  %p1733_p6 = scmp.lt.s32.totalorder %s27_s10, %s27_s10 }
  0x13   :  { %p1729_p5 = scmp.ne.s32.totalorder %s27_s10, %s1728_s15  ;;  %p1734_p7 = scmp.lt.s32.totalorder %s1728_s15, %s1728_s15 }
  0x15   :  { %p1735_p8 = por %p1734_p7, %p1733_p6 }
  0x17   :  { %p1736_p9 = pnand %p1735_p8, %p1729_p5 }
  0x19   :  { %1739 = shalt.err (!%p1736_p9)
}
  0x1a   :  { %32 = dma.hbm_to_vmem [thread:$0]  %s2175_s1, 1024, %s27_s10, [#allocation6], %s1810_s12, %s1810_s12, %s1811_s6  }
  0x1b   :  { %s1812_s18 = smov [#allocation10]  }
  0x1c   :  { %s50_s19 = sshll.u32 %s1812_s18, 4  ;;  %s51_s19 = int_to_ptr.vmem [resolvable:$true] %s50_s19 }
  0x1d   :  { %s1748_s20 = scalar_lea.vmem %s51_s19, 8192  ;;  %p1753_p11 = scmp.lt.s32.totalorder %s51_s19, %s51_s19 }
  0x1e   :  { %p1749_p10 = scmp.ne.s32.totalorder %s51_s19, %s1748_s20  ;;  %p1754_p12 = scmp.lt.s32.totalorder %s1748_s20, %s1748_s20 }
  0x20   :  { %p1755_p13 = por %p1754_p12, %p1753_p11 }
  0x22   :  { %p1756_p0 = pnand %p1755_p13, %p1749_p10 }
  0x24   :  { %1759 = shalt.err (!%p1756_p0)
}
  0x25   :  { %s1813_s2 = smov 64   ;;  %s1814_s21 = smov 4  }
  0x26   :  { %56 = dma.hbm_to_vmem [thread:$0]  %s2177_s3, 8192, %s51_s19, [#allocation9], %s1813_s2, %s1813_s2, %s1814_s21  }
  0x27   :  { %s1815_s24 = smov [#allocation11]  }
  0x28   :  { %s68_s25 = sshll.u32 %s1815_s24, 4  ;;  %s69_s25 = int_to_ptr.vmem [resolvable:$true] %s68_s25 }
  0x29   :  { %s1768_s1 = scalar_lea.vmem %s69_s25, 2048  ;;  %p1773_p2 = scmp.lt.s32.totalorder %s69_s25, %s69_s25 }
  0x2a   :  { %p1769_p1 = scmp.ne.s32.totalorder %s69_s25, %s1768_s1  ;;  %p1774_p3 = scmp.lt.s32.totalorder %s1768_s1, %s1768_s1 }
  0x2c   :  { %p1775_p4 = por %p1774_p3, %p1773_p2 }
  0x2e   :  { %p1776_p5 = pnand %p1775_p4, %p1769_p1 }
  0x30   :  { %1779 = shalt.err (!%p1776_p5)
}
  0x31   :  { %s1816_s26 = smov 128   ;;  %s1817_s27 = smov 8  }
  0x32   :  { %74 = dma.hbm_to_vmem [thread:$0]  %s2181_s7, 2048, %s69_s25, [#allocation12], %s1816_s26, %s1816_s26, %s1817_s27  }
  0x33   :  { %1800 = dma.done.wait [#allocation6], 1024  }
  0x34   :  { %1801 = vsyncadd [#allocation6], 4294966272 }
  0x35   :  { %1802 = dma.done.wait [#allocation9], 9216  }
  0x36   :  { %1803 = vsyncadd [#allocation9], 4294958080 }
  0x37   :  { %1804 = dma.done.wait [#allocation12], 2048  }
  0x38   :  { %1805 = vsyncadd [#allocation12], 4294965248  ;;  %v1881_v1 = vld [vmem:[#allocation10 + $0x78] sm:$0xff]   ;;  %v1892_v5 = vld [vmem:[#allocation10 + $0x70] sm:$0xff]   ;;  %v1818_v9 = vmov 0   ;;  %vm1242_vm3 = vcmask 7168  }
  0x39   :  { %v1883_v2 = vld [vmem:[#allocation10 + $0xf8] sm:$0xff]   ;;  %1389 = vmatprep.subr.bf16.mxu0 %v1881_v1  ;;  %v1895_v6 = vld [vmem:[#allocation10 + $0xf0] sm:$0xff]   ;;  %1631 = vset.pattern.permute.xlu0 %v1818_v9  ;;  %v1904_v10 = vld [vmem:[#allocation10 + $0x68] sm:$0xff]   ;;  %vm1282_vm8 = vcmask 0  }
  0x3a   :  { %v1886_v3 = vld [vmem:[#allocation10 + $0x38] sm:$0xff]   ;;  %1411 = vmatprep.subr.bf16.mxu1 %v1883_v2  ;;  %v1898_v7 = vld [vmem:[#allocation10 + $0x30] sm:$0xff]   ;;  %v1907_v11 = vld [vmem:[#allocation10 + $0xe8] sm:$0xff]  }
  0x3b   :  { %v1889_v4 = vld [vmem:[#allocation10 + $0xb8] sm:$0xff]   ;;  %1390 = vmatpush3.bf16.msra.mxu0 %v1886_v3  ;;  %v1901_v8 = vld [vmem:[#allocation10 + $0xb0] sm:$0xff]   ;;  %v1910_v12 = vld [vmem:[#allocation10 + $0x28] sm:$0xff]  }
  0x3c   :  { %1412 = vmatpush3.bf16.msra.mxu1 %v1889_v4  ;;  %1391 = vmatprep.subr.bf16.mxu0 %v1892_v5  ;;  %v1913_v13 = vld [vmem:[#allocation10 + $0xa8] sm:$0xff]   ;;  %v1916_v14 = vld [vmem:[#allocation10 + $0x60] sm:$0xff]   ;;  %v1928_v18 = vld [vmem:[#allocation10 + $0x58] sm:$0xff]  }
  0x3d   :  { %1413 = vmatprep.subr.bf16.mxu1 %v1895_v6  ;;  %v1919_v15 = vld [vmem:[#allocation10 + $0xe0] sm:$0xff]   ;;  %v1931_v19 = vld [vmem:[#allocation10 + $0xd8] sm:$0xff]   ;;  %v1940_v22 = vld [vmem:[#allocation10 + $0x50] sm:$0xff]  }
  0x3e   :  { %v1922_v16 = vld [vmem:[#allocation10 + $0x20] sm:$0xff]   ;;  %v1934_v20 = vld [vmem:[#allocation10 + $0x18] sm:$0xff]   ;;  %v1943_v23 = vld [vmem:[#allocation10 + $0xd0] sm:$0xff]  }
  0x3f   :  { %1392 = vmatpush3.bf16.msra.mxu0 %v1898_v7  ;;  %v1925_v17 = vld [vmem:[#allocation10 + $0xa0] sm:$0xff]   ;;  %v1937_v21 = vld [vmem:[#allocation10 + $0x98] sm:$0xff]   ;;  %v1946_v24 = vld [vmem:[#allocation10 + $0x10] sm:$0xff]  }
  0x40   :  { %1414 = vmatpush3.bf16.msra.mxu1 %v1901_v8  ;;  %1393 = vmatprep.subr.bf16.mxu0 %v1904_v10  ;;  %v1949_v25 = vld [vmem:[#allocation10 + $0x90] sm:$0xff]   ;;  %v1952_v26 = vld [vmem:[#allocation10 + $0x48] sm:$0xff]   ;;  %v1964_v30 = vld [vmem:[#allocation10 + $0x40] sm:$0xff]  }
  0x41   :  { %1415 = vmatprep.subr.bf16.mxu1 %v1907_v11  ;;  %v1955_v27 = vld [vmem:[#allocation10 + $0xc8] sm:$0xff]   ;;  %v1967_v31 = vld [vmem:[#allocation10 + $0xc0] sm:$0xff]   ;;  %v1977_v42 = vld [vmem:[#allocation10 + $0x178] sm:$0xff]  }
  0x42   :  { %v1958_v28 = vld [vmem:[#allocation10 + $0x8] sm:$0xff]   ;;  %v1970_v32 = vld [vmem:[#allocation10] sm:$0xff]   ;;  %v1979_v43 = vld [vmem:[#allocation10 + $0x1f8] sm:$0xff]  }
  0x43   :  { %1394 = vmatpush3.bf16.msra.mxu0 %v1910_v12  ;;  %v1961_v29 = vld [vmem:[#allocation10 + $0x88] sm:$0xff]   ;;  %v1973_v33 = vld [vmem:[#allocation10 + $0x80] sm:$0xff]   ;;  %v1981_v44 = vld [vmem:[#allocation10 + $0x138] sm:$0xff]  }
  0x44   :  { %1416 = vmatpush3.bf16.msra.mxu1 %v1913_v13  ;;  %1395 = vmatprep.subr.bf16.mxu0 %v1916_v14  ;;  %v226_v34 = vld [vmem:[#allocation5] sm:$0xff]  ;;  %v227_v36 = vld [vmem:[#allocation5 + $0x8] sm:$0xff]  ;;  %v1984_v45 = vld [vmem:[#allocation10 + $0x1b8] sm:$0xff]  }
  0x45   :  { %1417 = vmatprep.subr.bf16.mxu1 %v1919_v15  ;;  %v230_v35 = vld [vmem:[#allocation5 + $0x20] sm:$0xff]  ;;  %v231_v39 = vld [vmem:[#allocation5 + $0x28] sm:$0xff]  ;;  %v1988_v46 = vld [vmem:[#allocation10 + $0x170] sm:$0xff]  }
  0x46   :  { %v1301_v37 = vcombine.low %v226_v34, %v230_v35  ;;  %v1302_v38 = vcombine.high %v226_v34, %v230_v35  ;;  %v1303_v40 = vcombine.low %v227_v36, %v231_v39  ;;  %v1304_v41 = vcombine.high %v227_v36, %v231_v39  ;;  %v1991_v47 = vld [vmem:[#allocation10 + $0x1f0] sm:$0xff]   ;;  %v2000_v50 = vld [vmem:[#allocation10 + $0x168] sm:$0xff]   ;;  %v2012_v54 = vld [vmem:[#allocation10 + $0x160] sm:$0xff]  }
  0x47   :  { %1396 = vmatpush3.bf16.msra.mxu0 %v1922_v16  ;;  %v1994_v48 = vld [vmem:[#allocation10 + $0x130] sm:$0xff]   ;;  %v2003_v51 = vld [vmem:[#allocation10 + $0x1e8] sm:$0xff]   ;;  %v2015_v55 = vld [vmem:[#allocation10 + $0x1e0] sm:$0xff]  }
  0x48   :  { %1418 = vmatpush3.bf16.msra.mxu1 %v1925_v17  ;;  %1397 = vmatprep.subr.bf16.mxu0 %v1928_v18  ;;  %v1997_v49 = vld [vmem:[#allocation10 + $0x1b0] sm:$0xff]   ;;  %v2006_v52 = vld [vmem:[#allocation10 + $0x128] sm:$0xff]   ;;  %v2018_v56 = vld [vmem:[#allocation10 + $0x120] sm:$0xff]  }
  0x49   :  { %1419 = vmatprep.subr.bf16.mxu1 %v1931_v19  ;;  %690 = vmatprep.mubr.bf16.mxu0 %v1302_v38  ;;  %v2009_v53 = vld [vmem:[#allocation10 + $0x1a8] sm:$0xff]   ;;  %v2021_v57 = vld [vmem:[#allocation10 + $0x1a0] sm:$0xff]   ;;  %v2024_v58 = vld [vmem:[#allocation10 + $0x158] sm:$0xff]  }
  0x4a   :  { %731 = vmatprep.mubr.bf16.mxu1 %v1304_v41  ;;  %v2027_v59 = vld [vmem:[#allocation10 + $0x1d8] sm:$0xff]   ;;  %v2036_v62 = vld [vmem:[#allocation10 + $0x150] sm:$0xff]   ;;  %v2048_v34 = vld [vmem:[#allocation10 + $0x148] sm:$0xff]  }
  0x4b   :  { %1398 = vmatpush3.bf16.msra.mxu0 %v1934_v20  ;;  %2197 = vst [vmem:[#allocation18_spill] sm:$0xff] %v2027_v59  ;;  %v2030_v60 = vld [vmem:[#allocation10 + $0x118] sm:$0xff]   ;;  %2200 = vst [vmem:[#allocation21_spill] sm:$0xff] %v2036_v62  ;;  %v2039_v63 = vld [vmem:[#allocation10 + $0x1d0] sm:$0xff]  }
  0x4c   :  { %1420 = vmatpush3.bf16.msra.mxu1 %v1937_v21  ;;  %1399 = vmatprep.subr.bf16.mxu0 %v1940_v22  ;;  %2198 = vst [vmem:[#allocation19_spill] sm:$0xff] %v2030_v60  ;;  %v2033_v61 = vld [vmem:[#allocation10 + $0x198] sm:$0xff]   ;;  %2201 = vst [vmem:[#allocation22_spill] sm:$0xff] %v2039_v63  ;;  %v2042_v0 = vld [vmem:[#allocation10 + $0x110] sm:$0xff]  }
  0x4d   :  { %1421 = vmatprep.subr.bf16.mxu1 %v1943_v23  ;;  %2199 = vst [vmem:[#allocation20_spill] sm:$0xff] %v2033_v61  ;;  %2202 = vst [vmem:[#allocation23_spill] sm:$0xff] %v2042_v0  ;;  %v2045_v9 = vld [vmem:[#allocation10 + $0x190] sm:$0xff]   ;;  %v2051_v35 = vld [vmem:[#allocation10 + $0x1c8] sm:$0xff]  }
  0x4e   :  { %2203 = vst [vmem:[#allocation24_spill] sm:$0xff] %v2045_v9  ;;  %2204 = vst [vmem:[#allocation25_spill] sm:$0xff] %v2048_v34  ;;  %v2054_v36 = vld [vmem:[#allocation10 + $0x108] sm:$0xff]   ;;  %v2060_v38 = vld [vmem:[#allocation10 + $0x140] sm:$0xff]  }
  0x4f   :  { %1400 = vmatpush3.bf16.msra.mxu0 %v1946_v24  ;;  %2205 = vst [vmem:[#allocation26_spill] sm:$0xff] %v2051_v35  ;;  %2206 = vst [vmem:[#allocation27_spill] sm:$0xff] %v2054_v36  ;;  %v2063_v39 = vld [vmem:[#allocation10 + $0x1c0] sm:$0xff]  }
  0x50   :  { %1422 = vmatpush3.bf16.msra.mxu1 %v1949_v25  ;;  %1401 = vmatprep.subr.bf16.mxu0 %v1952_v26  ;;  %2208 = vst [vmem:[#allocation29_spill] sm:$0xff] %v2060_v38  ;;  %2209 = vst [vmem:[#allocation30_spill] sm:$0xff] %v2063_v39  ;;  %v2069_v41 = vld [vmem:[#allocation10 + $0x180] sm:$0xff]  }
  0x51   :  { %1423 = vmatprep.subr.bf16.mxu1 %v1955_v27 }
  0x53   :  { %1402 = vmatpush3.bf16.msra.mxu0 %v1958_v28 }
  0x54   :  { %1424 = vmatpush3.bf16.msra.mxu1 %v1961_v29  ;;  %1403 = vmatprep.subr.bf16.mxu0 %v1964_v30 }
  0x55   :  { %1425 = vmatprep.subr.bf16.mxu1 %v1967_v31 }
  0x57   :  { %1404 = vmatpush3.bf16.msra.mxu0 %v1970_v32 }
  0x58   :  { %1426 = vmatpush3.bf16.msra.mxu1 %v1973_v33  ;;  %1433 = vmatprep.subr.bf16.mxu0 %v1977_v42 }
  0x59   :  { %1455 = vmatprep.subr.bf16.mxu1 %v1979_v43 }
  0x5a   :  { %691 = vmatmul.mubr.bf16.vlgmr.msra.gmra.mxu0 %v1301_v37  ;;  %v2057_v37 = vld [vmem:[#allocation10 + $0x188] sm:$0xff]  }
  0x5b   :  { %732 = vmatmul.mubr.bf16.vlgmr.msra.gmra.mxu1 %v1303_v40  ;;  %1434 = vmatpush3.bf16.msra.mxu0 %v1981_v44  ;;  %2207 = vst [vmem:[#allocation28_spill] sm:$0xff] %v2057_v37  ;;  %v2066_v40 = vld [vmem:[#allocation10 + $0x100] sm:$0xff]  }
  0x5c   :  { %1456 = vmatpush3.bf16.msra.mxu1 %v1984_v45  ;;  %1435 = vmatprep.subr.bf16.mxu0 %v1988_v46  ;;  %2210 = vst [vmem:[#allocation31_spill] sm:$0xff] %v2066_v40 }
  0x5d   :  { %1457 = vmatprep.subr.bf16.mxu1 %v1991_v47 }
  0x5f   :  { %1436 = vmatpush3.bf16.msra.mxu0 %v1994_v48 }
  0x60   :  { %1458 = vmatpush3.bf16.msra.mxu1 %v1997_v49  ;;  %1437 = vmatprep.subr.bf16.mxu0 %v2000_v50 }
  0x61   :  { %1459 = vmatprep.subr.bf16.mxu1 %v2003_v51 }
  0x63   :  { %1438 = vmatpush3.bf16.msra.mxu0 %v2006_v52 }
  0x64   :  { %1460 = vmatpush3.bf16.msra.mxu1 %v2009_v53  ;;  %1439 = vmatprep.subr.bf16.mxu0 %v2012_v54 }
  0x65   :  { %1461 = vmatprep.subr.bf16.mxu1 %v2015_v55 }
  0x67   :  { %1440 = vmatpush3.bf16.msra.mxu0 %v2018_v56 }
  0x68   :  { %1462 = vmatpush3.bf16.msra.mxu1 %v2021_v57  ;;  %1441 = vmatprep.subr.bf16.mxu0 %v2024_v58 }
  0x69   :  { %1463 = vmatprep.subr.bf16.mxu1 %v2027_v59 }
  0x6b   :  { %1442 = vmatpush3.bf16.msra.mxu0 %v2030_v60  ;;  %v829_v60 = vld [vmem:[#allocation8 + $0x8] sm:$0xff] }
  0x6c   :  { %1464 = vmatpush3.bf16.msra.mxu1 %v2033_v61  ;;  %1443 = vmatprep.subr.bf16.mxu0 %v2036_v62  ;;  %v828_v62 = vld [vmem:[#allocation8] sm:$0xff] }
  0x6d   :  { %1465 = vmatprep.subr.bf16.mxu1 %v2039_v63  ;;  %v233_v63 = vld [vmem:[#allocation5 + $0x38] sm:$0xff] }
  0x6f   :  { %1444 = vmatpush3.bf16.msra.mxu0 %v2042_v0  ;;  %v229_v0 = vld [vmem:[#allocation5 + $0x18] sm:$0xff] }
  0x70   :  { %1466 = vmatpush3.bf16.msra.mxu1 %v2045_v9  ;;  %1445 = vmatprep.subr.bf16.mxu0 %v2048_v34  ;;  %v228_v34 = vld [vmem:[#allocation5 + $0x10] sm:$0xff]  ;;  %v1308_v61 = vcombine.high %v229_v0, %v233_v63 }
  0x71   :  { %1467 = vmatprep.subr.bf16.mxu1 %v2051_v35  ;;  %v232_v35 = vld [vmem:[#allocation5 + $0x30] sm:$0xff] }
  0x72   :  { %v1305_v9 = vcombine.low %v228_v34, %v232_v35  ;;  %813 = vmatprep.mubr.bf16.mxu1 %v1308_v61 }
  0x73   :  { %1446 = vmatpush3.bf16.msra.mxu0 %v2054_v36  ;;  %v1306_v36 = vcombine.high %v228_v34, %v232_v35  ;;  %v1047_v34 = vld [vmem:[%s2174_s0] sm:$0xff] }
  0x74   :  { %1468 = vmatpush3.bf16.msra.mxu1 %v2057_v37  ;;  %1447 = vmatprep.subr.bf16.mxu0 %v2060_v38  ;;  %v1307_v37 = vcombine.low %v229_v0, %v233_v63  ;;  %v832_v38 = vld [vmem:[#allocation8 + $0x20] sm:$0xff] }
  0x75   :  { %1469 = vmatprep.subr.bf16.mxu1 %v2063_v39  ;;  %v833_v39 = vld [vmem:[#allocation8 + $0x28] sm:$0xff]  ;;  %772 = vmatprep.mubr.bf16.mxu0 %v1306_v36  ;;  %v1374_v59 = vcombine.high %v828_v62, %v832_v38 }
  0x76   :  { %1070 = vperm.xlu0 %1631, %v1047_v34  }
  0x77   :  { %1448 = vmatpush3.bf16.msra.mxu0 %v2066_v40  ;;  %v1376_v40 = vcombine.high %v829_v60, %v833_v39 }
  0x78   :  { %1470 = vmatpush3.bf16.msra.mxu1 %v2069_v41  ;;  %1477 = vmatprep.subr.bf16.mxu0 %v1881_v1  ;;  %v1048_v1 = vld [vmem:[%s2174_s0 + $0x8] sm:$0xff] }
  0x79   :  { %1499 = vmatprep.subr.bf16.mxu1 %v1883_v2  ;;  %v1373_v2 = vcombine.low %v828_v62, %v832_v38 }
  0x7a   :  { %773 = vmatmul.mubr.bf16.vlgmr.msra.gmra.mxu0 %v1305_v9  ;;  %1075 = vperm.xlu0 %1631, %v1048_v1  }
  0x7b   :  { %814 = vmatmul.mubr.bf16.vlgmr.msra.gmra.mxu1 %v1307_v37  ;;  %1478 = vmatpush3.bf16.msra.mxu0 %v1886_v3  ;;  %v830_v3 = vld [vmem:[#allocation8 + $0x10] sm:$0xff] }
  0x7c   :  { %1500 = vmatpush3.bf16.msra.mxu1 %v1889_v4  ;;  %1479 = vmatprep.subr.bf16.mxu0 %v1892_v5  ;;  %v834_v4 = vld [vmem:[#allocation8 + $0x30] sm:$0xff]  ;;  %v1375_v5 = vcombine.low %v829_v60, %v833_v39 }
  0x7d   :  { %1501 = vmatprep.subr.bf16.mxu1 %v1895_v6  ;;  %908 = vmatprep.mubr.bf16.mxu0 %v1374_v59  ;;  %v831_v6 = vld [vmem:[#allocation8 + $0x18] sm:$0xff] }
  0x7e   :  { %949 = vmatprep.mubr.bf16.mxu1 %v1376_v40 }
  0x7f   :  { %1480 = vmatpush3.bf16.msra.mxu0 %v1898_v7  ;;  %v835_v7 = vld [vmem:[#allocation8 + $0x38] sm:$0xff] }
  0x80   :  { %1502 = vmatpush3.bf16.msra.mxu1 %v1901_v8  ;;  %1481 = vmatprep.subr.bf16.mxu0 %v1904_v10  ;;  %v1378_v8 = vcombine.high %v830_v3, %v834_v4  ;;  %v1380_v10 = vcombine.high %v831_v6, %v835_v7 }
  0x81   :  { %1503 = vmatprep.subr.bf16.mxu1 %v1907_v11  ;;  %v2211_v11 = vld [vmem:[#allocation18_spill] sm:$0xff] }
  0x83   :  { %1482 = vmatpush3.bf16.msra.mxu0 %v1910_v12  ;;  %v2212_v12 = vld [vmem:[#allocation19_spill] sm:$0xff] }
  0x84   :  { %1504 = vmatpush3.bf16.msra.mxu1 %v1913_v13  ;;  %1483 = vmatprep.subr.bf16.mxu0 %v1916_v14  ;;  %v2213_v13 = vld [vmem:[#allocation20_spill] sm:$0xff]  ;;  %v2214_v14 = vld [vmem:[#allocation21_spill] sm:$0xff] }
  0x85   :  { %1505 = vmatprep.subr.bf16.mxu1 %v1919_v15  ;;  %v2215_v15 = vld [vmem:[#allocation22_spill] sm:$0xff] }
  0x87   :  { %1484 = vmatpush3.bf16.msra.mxu0 %v1922_v16  ;;  %v2216_v16 = vld [vmem:[#allocation23_spill] sm:$0xff] }
  0x88   :  { %1506 = vmatpush3.bf16.msra.mxu1 %v1925_v17  ;;  %1485 = vmatprep.subr.bf16.mxu0 %v1928_v18  ;;  %v2217_v17 = vld [vmem:[#allocation24_spill] sm:$0xff]  ;;  %v2218_v18 = vld [vmem:[#allocation25_spill] sm:$0xff] }
  0x89   :  { %1507 = vmatprep.subr.bf16.mxu1 %v1931_v19  ;;  %v2219_v19 = vld [vmem:[#allocation26_spill] sm:$0xff] }
  0x8b   :  { %1486 = vmatpush3.bf16.msra.mxu0 %v1934_v20  ;;  %v2220_v20 = vld [vmem:[#allocation27_spill] sm:$0xff] }
  0x8c   :  { %1508 = vmatpush3.bf16.msra.mxu1 %v1937_v21  ;;  %1487 = vmatprep.subr.bf16.mxu0 %v1940_v22  ;;  %v2221_v21 = vld [vmem:[#allocation28_spill] sm:$0xff]  ;;  %v2222_v22 = vld [vmem:[#allocation29_spill] sm:$0xff] }
  0x8d   :  { %1509 = vmatprep.subr.bf16.mxu1 %v1943_v23  ;;  %v2223_v23 = vld [vmem:[#allocation30_spill] sm:$0xff] }
  0x8f   :  { %1488 = vmatpush3.bf16.msra.mxu0 %v1946_v24  ;;  %v1377_v24 = vcombine.low %v830_v3, %v834_v4 }
  0x90   :  { %1510 = vmatpush3.bf16.msra.mxu1 %v1949_v25  ;;  %1489 = vmatprep.subr.bf16.mxu0 %v1952_v26  ;;  %v2224_v25 = vld [vmem:[#allocation31_spill] sm:$0xff]  ;;  %v1379_v26 = vcombine.low %v831_v6, %v835_v7 }
  0x91   :  { %1511 = vmatprep.subr.bf16.mxu1 %v1955_v27  ;;  %v1135_v27 = vld [vmem:[#allocation11 + $0x78] sm:$0xff] }
  0x93   :  { %1490 = vmatpush3.bf16.msra.mxu0 %v1958_v28  ;;  %v1134_v28 = vld [vmem:[#allocation11 + $0x70] sm:$0xff] }
  0x94   :  { %1512 = vmatpush3.bf16.msra.mxu1 %v1961_v29  ;;  %1491 = vmatprep.subr.bf16.mxu0 %v1964_v30  ;;  %v1133_v29 = vld [vmem:[#allocation11 + $0x68] sm:$0xff]  ;;  %v1132_v30 = vld [vmem:[#allocation11 + $0x60] sm:$0xff] }
  0x95   :  { %1513 = vmatprep.subr.bf16.mxu1 %v1967_v31  ;;  %v1131_v31 = vld [vmem:[#allocation11 + $0x58] sm:$0xff] }
  0x97   :  { %1492 = vmatpush3.bf16.msra.mxu0 %v1970_v32  ;;  %v1130_v32 = vld [vmem:[#allocation11 + $0x50] sm:$0xff] }
  0x98   :  { %1514 = vmatpush3.bf16.msra.mxu1 %v1973_v33  ;;  %1521 = vmatprep.subr.bf16.mxu0 %v1977_v42  ;;  %v1129_v33 = vld [vmem:[#allocation11 + $0x48] sm:$0xff]  ;;  %v1128_v42 = vld [vmem:[#allocation11 + $0x40] sm:$0xff] }
  0x99   :  { %1543 = vmatprep.subr.bf16.mxu1 %v1979_v43  ;;  %v1127_v43 = vld [vmem:[#allocation11 + $0x38] sm:$0xff] }
  0x9a   :  { %909 = vmatmul.mubr.bf16.vlgmr.msra.gmra.mxu0 %v1373_v2  ;;  %v2152_v2 = vld [vmem:[%s2179_s5] ss:$0 sm:$0xff] }
  0x9b   :  { %950 = vmatmul.mubr.bf16.vlgmr.msra.gmra.mxu1 %v1375_v5  ;;  %1522 = vmatpush3.bf16.msra.mxu0 %v1981_v44  ;;  %v1126_v44 = vld [vmem:[#allocation11 + $0x30] sm:$0xff] }
  0x9c   :  { %1544 = vmatpush3.bf16.msra.mxu1 %v1984_v45  ;;  %1523 = vmatprep.subr.bf16.mxu0 %v1988_v46  ;;  %v1125_v45 = vld [vmem:[#allocation11 + $0x28] sm:$0xff]  ;;  %v1124_v46 = vld [vmem:[#allocation11 + $0x20] sm:$0xff] }
  0x9d   :  { %1545 = vmatprep.subr.bf16.mxu1 %v1991_v47  ;;  %990 = vmatprep.mubr.bf16.mxu0 %v1378_v8  ;;  %v1123_v47 = vld [vmem:[#allocation11 + $0x18] sm:$0xff] }
  0x9e   :  { %1031 = vmatprep.mubr.bf16.mxu1 %v1380_v10 }
  0x9f   :  { %1524 = vmatpush3.bf16.msra.mxu0 %v1994_v48  ;;  %v1122_v48 = vld [vmem:[#allocation11 + $0x10] sm:$0xff] }
  0xa0   :  { %1546 = vmatpush3.bf16.msra.mxu1 %v1997_v49  ;;  %1525 = vmatprep.subr.bf16.mxu0 %v2000_v50  ;;  %v1121_v49 = vld [vmem:[#allocation11 + $0x8] sm:$0xff]  ;;  %v1120_v50 = vld [vmem:[#allocation11] sm:$0xff] }
  0xa1   :  { %1547 = vmatprep.subr.bf16.mxu1 %v2003_v51 }
  0xa3   :  { %1526 = vmatpush3.bf16.msra.mxu0 %v2006_v52 }
  0xa4   :  { %1548 = vmatpush3.bf16.msra.mxu1 %v2009_v53  ;;  %1527 = vmatprep.subr.bf16.mxu0 %v2012_v54 }
  0xa5   :  { %1549 = vmatprep.subr.bf16.mxu1 %v2015_v55 }
  0xa7   :  { %1528 = vmatpush3.bf16.msra.mxu0 %v2018_v56 }
  0xa8   :  { %1550 = vmatpush3.bf16.msra.mxu1 %v2021_v57  ;;  %1529 = vmatprep.subr.bf16.mxu0 %v2024_v58 }
  0xa9   :  { %1551 = vmatprep.subr.bf16.mxu1 %v2211_v11 }
  0xab   :  { %1530 = vmatpush3.bf16.msra.mxu0 %v2212_v12 }
  0xac   :  { %1552 = vmatpush3.bf16.msra.mxu1 %v2213_v13  ;;  %1531 = vmatprep.subr.bf16.mxu0 %v2214_v14 }
  0xad   :  { %1553 = vmatprep.subr.bf16.mxu1 %v2215_v15 }
  0xaf   :  { %1532 = vmatpush3.bf16.msra.mxu0 %v2216_v16 }
  0xb0   :  { %1554 = vmatpush3.bf16.msra.mxu1 %v2217_v17  ;;  %1533 = vmatprep.subr.bf16.mxu0 %v2218_v18 }
  0xb1   :  { %1555 = vmatprep.subr.bf16.mxu1 %v2219_v19 }
  0xb3   :  { %1534 = vmatpush3.bf16.msra.mxu0 %v2220_v20 }
  0xb4   :  { %1556 = vmatpush3.bf16.msra.mxu1 %v2221_v21  ;;  %1535 = vmatprep.subr.bf16.mxu0 %v2222_v22 }
  0xb5   :  { %1557 = vmatprep.subr.bf16.mxu1 %v2223_v23 }
  0xb7   :  { %1536 = vmatpush3.bf16.msra.mxu0 %v2224_v25 }
  0xb8   :  { %1558 = vmatpush3.bf16.msra.mxu1 %v2069_v41  ;;  %1583 = vmatprep.subr.mxu0 %v1135_v27  ;;  %v2146_v41 = vld [vmem:[%s2178_s4] ss:$0 sm:$0xff]  ;;  %s1820_s4 = smov [#allocation13]  }
  0xb9   :  { %s1290_s5 = sshll.u32 %s1820_s4, 4  ;;  %s1291_s5 = int_to_ptr.vmem [resolvable:$true] %s1290_s5 }
  0xba   :  { %991 = vmatmul.mubr.bf16.vlgmr.msra.gmra.mxu0 %v1377_v24  ;;  %s1780_s6 = scalar_lea.vmem %s1291_s5, 16  ;;  %s1784_s13 = scalar_lea.vmem %s1291_s5, 32 }
  0xbb   :  { %1032 = vmatmul.mubr.bf16.vlgmr.msra.gmra.mxu1 %v1379_v26  ;;  %1584 = vmatpush3.msra.mxu0 %v1135_v27  ;;  %p1781_p6 = scmp.ne.s32.totalorder %s1291_s5, %s1780_s6  ;;  %p1785_p7 = scmp.lt.s32.totalorder %s1291_s5, %s1291_s5 }
  0xbc   :  { %1585 = vmatprep.subr.mxu0 %v1134_v28  ;;  %p1786_p8 = scmp.lt.s32.totalorder %s1784_s13, %s1780_s6 }
  0xbd   :  { %1586 = vmatpush3.msra.mxu0 %v1134_v28 }
  0xbe   :  { %1587 = vmatprep.subr.mxu0 %v1133_v29  ;;  %p1787_p9 = por %p1786_p8, %p1785_p7 }
  0xbf   :  { %1588 = vmatpush3.msra.mxu0 %v1133_v29 }
  0xc0   :  { %1589 = vmatprep.subr.mxu0 %v1132_v30  ;;  %p1788_p10 = pnand %p1787_p9, %p1781_p6 }
  0xc1   :  { %1590 = vmatpush3.msra.mxu0 %v1132_v30 }
  0xc2   :  { %1591 = vmatprep.subr.mxu0 %v1131_v31 }
  0xc3   :  { %1592 = vmatpush3.msra.mxu0 %v1131_v31 }
  0xc4   :  { %1593 = vmatprep.subr.mxu0 %v1130_v32 }
  0xc5   :  { %1594 = vmatpush3.msra.mxu0 %v1130_v32 }
  0xc6   :  { %1595 = vmatprep.subr.mxu0 %v1129_v33 }
  0xc7   :  { %1596 = vmatpush3.msra.mxu0 %v1129_v33 }
  0xc8   :  { %1597 = vmatprep.subr.mxu0 %v1128_v42 }
  0xc9   :  { %1598 = vmatpush3.msra.mxu0 %v1128_v42 }
  0xca   :  { %1599 = vmatprep.subr.mxu0 %v1127_v43 }
  0xcb   :  { %1600 = vmatpush3.msra.mxu0 %v1127_v43 }
  0xcc   :  { %1601 = vmatprep.subr.mxu0 %v1126_v44 }
  0xcd   :  { %1602 = vmatpush3.msra.mxu0 %v1126_v44 }
  0xce   :  { %1603 = vmatprep.subr.mxu0 %v1125_v45 }
  0xcf   :  { %1604 = vmatpush3.msra.mxu0 %v1125_v45 }
  0xd0   :  { %1605 = vmatprep.subr.mxu0 %v1124_v46 }
  0xd1   :  { %1606 = vmatpush3.msra.mxu0 %v1124_v46 }
  0xd2   :  { %1607 = vmatprep.subr.mxu0 %v1123_v47 }
  0xd3   :  { %1608 = vmatpush3.msra.mxu0 %v1123_v47 }
  0xd4   :  { %1609 = vmatprep.subr.mxu0 %v1122_v48 }
  0xd5   :  { %1610 = vmatpush3.msra.mxu0 %v1122_v48 }
  0xd6   :  { %1611 = vmatprep.subr.mxu0 %v1121_v49 }
  0xd7   :  { %1612 = vmatpush3.msra.mxu0 %v1121_v49 }
  0xd8   :  { %1613 = vmatprep.subr.mxu0 %v1120_v50 }
  0xd9   :  { %1614 = vmatpush3.msra.mxu0 %v1120_v50 }
  0xf1   :  { %v1071_v47 = vpop.permute.xlu0 %1070 }
 0x11a   :  { %v1405_v51 = vpop.f32.mrf.mxu0 }
 0x11b   :  { %v1427_v52 = vpop.f32.mrf.mxu1 }
 0x11c   :  { %v1406_v53 = vpop.f32.mrf.mxu0 }
 0x11d   :  { %v1428_v54 = vpop.f32.mrf.mxu1  ;;  %v1407_v62 = vadd.f32 %v1406_v53, %v1405_v51 }
 0x11e   :  { %v1408_v55 = vpop.f32.mrf.mxu0  ;;  %v1429_v63 = vadd.f32 %v1428_v54, %v1427_v52 }
 0x11f   :  { %v1430_v56 = vpop.f32.mrf.mxu1 }
 0x120   :  { %v1409_v57 = vpop.f32.mrf.mxu0  ;;  %v734_v36 = vadd.f32 %v1429_v63, %v1407_v62 }
 0x121   :  { %v1410_v58 = vadd.f32 %v1409_v57, %v1408_v55  ;;  %v1431_v59 = vpop.f32.mrf.mxu1  ;;  %v1076_v57 = vpop.permute.xlu0 %1075 }
 0x122   :  { %v1432_v60 = vadd.f32 %v1431_v59, %v1430_v56 }
 0x124   :  { %v737_v61 = vadd.f32 %v1432_v60, %v1410_v58 }
 0x13a   :  { %v1449_v0 = vpop.f32.mrf.mxu0 }
 0x13b   :  { %v1471_v9 = vpop.f32.mrf.mxu1 }
 0x13c   :  { %v1450_v35 = vpop.f32.mrf.mxu0 }
 0x13d   :  { %v1451_v37 = vadd.f32 %v1450_v35, %v1449_v0  ;;  %v1472_v38 = vpop.f32.mrf.mxu1 }
 0x13e   :  { %v1473_v39 = vadd.f32 %v1472_v38, %v1471_v9  ;;  %v1452_v5 = vpop.f32.mrf.mxu0 }
 0x13f   :  { %v775_v40 = vadd.f32 %v1451_v37, %v734_v36  ;;  %v1474_v6 = vpop.f32.mrf.mxu1 }
 0x140   :  { %v1453_v7 = vpop.f32.mrf.mxu0 }
 0x141   :  { %v816_v34 = vadd.f32 %v1473_v39, %v775_v40  ;;  %v1475_v8 = vpop.f32.mrf.mxu1  ;;  %v1454_v22 = vadd.f32 %v1453_v7, %v1452_v5 }
 0x142   :  { %v1476_v48 = vadd.f32 %v1475_v8, %v1474_v6  ;;  %v1231_v6 = vlaneseq }
 0x143   :  { %v1062_v1 = vadd.f32 %v2146_v41, %v816_v34  ;;  %v778_v42 = vadd.f32 %v1454_v22, %v737_v61 }
 0x144   :  { %v1232_v7 = vshrl.u32 %v1231_v6, 7 }
 0x145   :  { %v1084_v3 = vmax.f32 %v1062_v1, 0.0  ;;  %v819_v52 = vadd.f32 %v1476_v48, %v778_v42 }
 0x146   :  { %vm1234_vm2 = vcmp.lt.s32.totalorder %v1232_v7, 2 }
 0x147   :  { %v1092_v4 = vmul.f32 %v2152_v2, %v1084_v3  ;;  %v1063_v35 = vadd.f32 %v2146_v41, %v819_v52 }
 0x149   :  { %1094 = vadd.xlane.f32.xlu0 %v1092_v4  ;;  %v1085_v38 = vmax.f32 %v1063_v35, 0.0 }
 0x14b   :  { %v1093_v40 = vmul.f32 %v2152_v2, %v1085_v38 }
 0x15a   :  { %v1493_v10 = vpop.f32.mrf.mxu0 }
 0x15b   :  { %v1515_v11 = vpop.f32.mrf.mxu1 }
 0x15c   :  { %v1494_v12 = vpop.f32.mrf.mxu0 }
 0x15d   :  { %v1516_v13 = vpop.f32.mrf.mxu1  ;;  %v1495_v17 = vadd.f32 %v1494_v12, %v1493_v10  ;;  %v1383_v10 = vld [vmem:[#allocation4] ss:$0 sm:$0xff] }
 0x15e   :  { %v1496_v14 = vpop.f32.mrf.mxu0  ;;  %v1517_v18 = vadd.f32 %v1516_v13, %v1515_v11 }
 0x15f   :  { %v1518_v15 = vpop.f32.mrf.mxu1 }
 0x160   :  { %v1497_v16 = vpop.f32.mrf.mxu0  ;;  %v952_v24 = vadd.f32 %v1517_v18, %v1495_v17 }
 0x161   :  { %v1519_v19 = vpop.f32.mrf.mxu1  ;;  %v1498_v25 = vadd.f32 %v1497_v16, %v1496_v14  ;;  %v1819_v14 = vmov 0.0  }
 0x162   :  { %v1520_v26 = vadd.f32 %v1519_v19, %v1518_v15 }
 0x164   :  { %v955_v43 = vadd.f32 %v1520_v26, %v1498_v25 }
 0x17a   :  { %v1537_v20 = vpop.f32.mrf.mxu0 }
 0x17b   :  { %v1559_v21 = vpop.f32.mrf.mxu1 }
 0x17c   :  { %v1538_v23 = vpop.f32.mrf.mxu0 }
 0x17d   :  { %v1539_v27 = vadd.f32 %v1538_v23, %v1537_v20  ;;  %v1560_v28 = vpop.f32.mrf.mxu1 }
 0x17e   :  { %v1540_v29 = vpop.f32.mrf.mxu0  ;;  %v1561_v31 = vadd.f32 %v1560_v28, %v1559_v21 }
 0x17f   :  { %v993_v30 = vadd.f32 %v1539_v27, %v952_v24  ;;  %v1562_v32 = vpop.f32.mrf.mxu1 }
 0x180   :  { %v1541_v33 = vpop.f32.mrf.mxu0 }
 0x181   :  { %v1034_v44 = vadd.f32 %v1561_v31, %v993_v30  ;;  %v1542_v45 = vadd.f32 %v1541_v33, %v1540_v29  ;;  %v1563_v46 = vpop.f32.mrf.mxu1 }
 0x182   :  { %v1564_v51 = vadd.f32 %v1563_v46, %v1562_v32 }
 0x183   :  { %v1066_v49 = vsub.f32 %v816_v34, %v1034_v44  ;;  %v996_v50 = vadd.f32 %v1542_v45, %v955_v43  ;;  %v1064_v39 = vadd.f32 %v2146_v41, %v1034_v44 }
 0x185   :  { %v1078_v53 = vmul.f32 %v1071_v47, %v1066_v49  ;;  %v1037_v54 = vadd.f32 %v1564_v51, %v996_v50  ;;  %v1106_v34 = vmax.f32 %v1064_v39, 0.0 }
 0x187   :  { %v1080_v55 = vadd.f32 %v1078_v53, %v1034_v44  ;;  %v1067_v56 = vsub.f32 %v819_v52, %v1037_v54  ;;  %v1065_v1 = vadd.f32 %v2146_v41, %v1037_v54  ;;  %v1108_v3 = vmul.f32 %v2152_v2, %v1106_v34 }
 0x189   :  { %v1079_v58 = vmul.f32 %v1076_v57, %v1067_v56  ;;  %v1082_v59 = vadd.f32 %v2146_v41, %v1080_v55  ;;  %v1107_v4 = vmax.f32 %v1065_v1, 0.0 }
 0x18b   :  { %v1081_v60 = vadd.f32 %v1079_v58, %v1037_v54  ;;  %vm1116_vm0 = vcmp.gt.f32.partialorder %v1082_v59, 0.0  ;;  %v1109_v5 = vmul.f32 %v2152_v2, %v1107_v4 }
 0x18c   :  { %1615 = vmatprep.mubr.msk.f32.mxu0 %vm1116_vm0, %v2152_v2  ;;  %v1118_v0 = vsel %vm1116_vm0, %v2152_v2, 0.0 }
 0x18d   :  { %v1083_v61 = vadd.f32 %v2146_v41, %v1081_v60  ;;  %v1386_v41 = vsel %vm1234_vm2, 1.0, %v1819_v14 }
 0x18f   :  { %vm1117_vm1 = vcmp.gt.f32.partialorder %v1083_v61, 0.0 }
 0x190   :  { %1616 = vmatmul.mubr.msk.f32.vlgmr.msra.gmra.mxu0 %vm1117_vm1, %v2152_v2  ;;  %v1119_v36 = vsel %vm1117_vm1, %v2152_v2, 0.0 }
 0x1d2   :  { %v1095_v11 = vpop.xlane.xlu0 %1094 }
 0x1d3   :  { %v1104_v13 = vadd.f32 %v1383_v10, %v1095_v11 }
 0x1d5   :  { %v1240_v17 = vmul.f32 %v1386_v41, %v1104_v13 }
 0x1d7   :  { %v1243_v22 = vsel %vm1242_vm3, %v1240_v17, 0.0 }
 0x250   :  { %v1617_v62 = vpop.f32.mrf.mxu0 }
 0x251   :  { %v1212_v37 = vmul.f32 %v1617_v62, %v1119_v36 }
 0x252   :  { %v1202_v63 = vpop.f32.mrf.mxu0 }
 0x253   :  { %v1211_v9 = vmul.f32 %v1202_v63, %v1118_v0 }
 0x255   :  { %1213 = vadd.xlane.f32.xlu1 %v1211_v9 }
 0x259   :  { %1215 = vadd.xlane.f32.xlu1 %v1212_v37 }
 0x25d   :  { %1096 = vadd.xlane.f32.xlu1 %v1093_v40 }
 0x261   :  { %1110 = vadd.xlane.f32.xlu1 %v1108_v3 }
 0x265   :  { %1112 = vadd.xlane.f32.xlu1 %v1109_v5 }
 0x2de   :  { %v1214_v8 = vpop.xlane.xlu1 %1213 }
 0x2df   :  { %1696 = vrsqrt.f32 %v1214_v8  ;;  %vm1219_vm4 = vcmp.eq.f32.partialorder %v1214_v8, inf  ;;  %v1222_v25 = vand.u32 2147483648, %v1214_v8  ;;  %vm1221_vm5 = vcmp.eq.f32.partialorder %v1214_v8, 0.0 }
 0x2e2   :  { %v1216_v12 = vpop.xlane.xlu1 %1215 }
 0x2e3   :  { %1698 = vrsqrt.f32 %v1216_v12  ;;  %vm1226_vm6 = vcmp.eq.f32.partialorder %v1216_v12, inf  ;;  %v1229_v44 = vand.u32 2147483648, %v1216_v12  ;;  %vm1228_vm7 = vcmp.eq.f32.partialorder %v1216_v12, 0.0 }
 0x2e6   :  { %v1097_v15 = vpop.xlane.xlu1 %1096 }
 0x2e7   :  { %v1105_v16 = vadd.f32 %v1383_v10, %v1097_v15 }
 0x2e9   :  { %v1241_v18 = vmul.f32 0.0, %v1105_v16 }
 0x2ea   :  { %v1111_v19 = vpop.xlane.xlu1 %1110 }
 0x2eb   :  { %v1244_v2 = vsel %vm1242_vm3, %v1241_v18, 0.0  ;;  %v1114_v20 = vadd.f32 %v1383_v10, %v1111_v19 }
 0x2ec   :  { %v1697_v21 = vpop.eup %1696  ;;  %v1245_v24 = vadd.f32 %v1244_v2, %v1243_v22 }
 0x2ed   :  { %v1218_v23 = vmul.f32 %v1697_v21, %v1214_v8  ;;  %v1253_v28 = vmul.f32 %v1386_v41, %v1114_v20 }
 0x2ee   :  { %v1113_v26 = vpop.xlane.xlu1 %1112  ;;  %v1246_v42 = vrot.slane %v1245_v24, 4 }
 0x2ef   :  { %v1220_v27 = vsel %vm1219_vm4, %v1214_v8, %v1218_v23  ;;  %v1115_v29 = vadd.f32 %v1383_v10, %v1113_v26  ;;  %v1255_v46 = vsel %vm1242_vm3, %v1253_v28, 0.0 }
 0x2f0   :  { %v1699_v30 = vpop.eup %1698  ;;  %v1223_v31 = vsel %vm1221_vm5, %v1222_v25, %v1220_v27  ;;  %v1247_v52 = vadd.f32 %v1246_v42, %v1245_v24 }
 0x2f1   :  { %v1387_v32 = vadd.f32 -1.0, %v1223_v31  ;;  %v1225_v33 = vmul.f32 %v1699_v30, %v1216_v12  ;;  %v1254_v43 = vmul.f32 0.0, %v1115_v29 }
 0x2f2   :  { %v1248_v58 = vrot.slane %v1247_v52, 2 }
 0x2f3   :  { %v1227_v45 = vsel %vm1226_vm6, %v1216_v12, %v1225_v33  ;;  %v1256_v47 = vsel %vm1242_vm3, %v1254_v43, 0.0  ;;  %v1267_v50 = vmul.f32 %v1387_v32, %v1387_v32 }
 0x2f4   :  { %v1230_v48 = vsel %vm1228_vm7, %v1229_v44, %v1227_v45  ;;  %v1257_v49 = vadd.f32 %v1256_v47, %v1255_v46  ;;  %v1249_v62 = vadd.f32 %v1248_v58, %v1247_v52 }
 0x2f5   :  { %v1388_v51 = vadd.f32 -1.0, %v1230_v48  ;;  %v1269_v56 = vmul.f32 %v1386_v41, %v1267_v50 }
 0x2f6   :  { %v1258_v53 = vrot.slane %v1257_v49, 4  ;;  %v1250_v35 = vrot.slane %v1249_v62, 1 }
 0x2f7   :  { %v1268_v54 = vmul.f32 %v1388_v51, %v1388_v51 }
 0x2f8   :  { %v1259_v55 = vadd.f32 %v1258_v53, %v1257_v49  ;;  %v1251_v39 = vadd.f32 %v1250_v35, %v1249_v62 }
 0x2f9   :  { %v1270_v57 = vmul.f32 0.0, %v1268_v54 }
 0x2fa   :  { %v1260_v59 = vrot.slane %v1259_v55, 2  ;;  %v1252_v3 = vmul.f32 0.5, %v1251_v39 }
 0x2fb   :  { %v1271_v60 = vadd.f32 %v1270_v57, %v1269_v56 }
 0x2fc   :  { %v1261_v61 = vadd.f32 %v1260_v59, %v1259_v55 }
 0x2fd   :  { %v1272_v63 = vrot.slane %v1271_v60, 4 }
 0x2fe   :  { %v1262_v0 = vrot.slane %v1261_v61, 1 }
 0x2ff   :  { %v1273_v9 = vadd.f32 %v1272_v63, %v1271_v60 }
 0x300   :  { %v1263_v37 = vadd.f32 %v1262_v0, %v1261_v61 }
 0x301   :  { %v1274_v36 = vrot.slane %v1273_v9, 2 }
 0x302   :  { %v1264_v34 = vmul.f32 0.5, %v1263_v37 }
 0x303   :  { %v1275_v38 = vadd.f32 %v1274_v36, %v1273_v9 }
 0x304   :  { %v1279_v5 = vsub.f32 %v1252_v3, %v1264_v34 }
 0x305   :  { %v1276_v40 = vrot.slane %v1275_v38, 1 }
 0x307   :  { %v1277_v1 = vadd.f32 %v1276_v40, %v1275_v38 }
 0x309   :  { %v1278_v4 = vmul.f32 0.5, %v1277_v1 }
 0x30b   :  { %v1280_v6 = vmul.f32 0.1, %v1278_v4 }
 0x30d   :  { %v1281_v7 = vadd.f32 %v1280_v6, %v1279_v5 }
 0x30f   :  { %1283 = vst.msk [vmem:[#allocation13] sm:$0x1] %vm1282_vm8, %v1281_v7 }
 0x310   :  { %1791 = shalt.err (!%p1788_p10)
}
 0x311   :  { %1293 = dma.vmem_to_hbm [thread:$0]  %s1291_s5, 16, %s2182_s8, [#allocation7]  }
 0x312   :  { %1806 = dma.done.wait [#allocation7], 16  }
 0x313   :  { %1807 = vsyncadd [#allocation7], 4294967280 }
 0x314   :  { %1297 = vsyncpa [#allocation6], 1 }
 0x315   :  { %1298 = vsyncpa [#allocation9], 1 }
 0x316   :  { %1299 = vsyncpa [#allocation12], 1 }
 0x317   :  { %1300 = vsyncpa [#allocation7], 1 }

</bundles_post_ra>
